<compile_context>
chip_gen: v6e
topology: v6e:2x2x1
jax: 0.10.0
libtpu: 0.0.40
codegen_flags: <defaults>
</compile_context>

<pallas_src>
import functools

import jax
import jax.numpy as jnp
from jax import lax
from jax.experimental import pallas as pl
from jax.experimental.pallas import tpu as pltpu

EPS = 1e-5
NEG_SLOPE = 0.2

# channel widths of conv1..conv4 (fixed by the module)
C1, C2, C3, C4 = 64, 64, 128, 256
CPF = C1 + C2 + C3 + C4          # 512 = conv5 input width


def _lrelu(v):
    # leaky_relu(0.2): single VPU max (+mul) instead of compare+select
    return jnp.maximum(v, NEG_SLOPE * v)


def _round_up(v, m):
    return ((v + m - 1) // m) * m


def _round_down_pow2(v):
    return 1 << (max(1, int(v)).bit_length() - 1)


def _vmem_capacity_bytes():
    try:
        return int(pltpu.get_tpu_info().vmem_capacity_bytes)
    except Exception:
        return 128 * 1024 * 1024


# ----------------------------------------------------------------------------
# Kernel 1: knn pairwise metric  -> pairwise[b, i, j] = -||x_i - x_j||^2
#           single MXU matmul on augmented operands; bf16 output.
# ----------------------------------------------------------------------------
def _pdist_kernel(a_ref, bT_ref, o_ref, *, out_dtype):
    # A_i . B_j = 2*x_i.x_j - ||x_i||^2 - ||x_j||^2 = -||x_i - x_j||^2
    d = lax.dot_general(a_ref[0], bT_ref[0], (((1,), (0,)), ((), ())),
                        preferred_element_type=jnp.float32)
    o_ref[0] = d.astype(out_dtype)


def pairwise_neg_sqdist(x3, *, out_dtype=jnp.bfloat16, vmem_limit_bytes=None):
    """x3: (B, N, 3) float32 -> (B, N, N) negative squared distances (out_dtype)."""
    B, N, _ = x3.shape
    x3 = x3.astype(jnp.float32)
    sq = jnp.sum(x3 * x3, axis=-1, keepdims=True)                    # (B, N, 1)
    one = jnp.ones_like(sq)
    zpad = jnp.zeros((B, N, 3), jnp.float32)
    a_aug = jnp.concatenate([2.0 * x3, -sq, -one, zpad], axis=-1)    # (B, N, 8)
    # RHS pre-transposed on host -> lane-dense (8, N) resident block (no per-step transpose)
    b_augT = jnp.transpose(
        jnp.concatenate([x3, one, sq, zpad], axis=-1), (0, 2, 1))    # (B, 8, N)

    # ~2 MiB output block (double-buffered -> 4 MiB), safe on v5e's small default scope.
    out_bytes_target = 2 * 1024 * 1024
    ti = out_bytes_target // max(1, N * jnp.dtype(out_dtype).itemsize)
    ti = max(8, min(512, (ti // 8) * 8))
    ti = min(ti, _round_up(N, 8))
    n_rows = _round_up(N, ti)
    if n_rows != N:
        a_aug = jnp.pad(a_aug, ((0, 0), (0, n_rows - N), (0, 0)))

    out = pl.pallas_call(
        functools.partial(_pdist_kernel, out_dtype=out_dtype),
        out_shape=jax.ShapeDtypeStruct((B, n_rows, N), out_dtype),
        grid=(B, n_rows // ti),
        in_specs=[pl.BlockSpec((1, ti, 8), lambda b, i: (b, i, 0)),
                  pl.BlockSpec((1, 8, N), lambda b, i: (b, 0, 0))],
        out_specs=pl.BlockSpec((1, ti, N), lambda b, i: (b, i, 0)),
        compiler_params=pltpu.CompilerParams(
            dimension_semantics=("parallel", "parallel"),
            vmem_limit_bytes=vmem_limit_bytes),
    )(a_aug, b_augT)
    return out[:, :N, :]


# ----------------------------------------------------------------------------
# Kernel 2 (fused): conv1..conv4 (+k-max) -> conv5 -> global max/avg pool ->
#                   linear1+bn6+lrelu -> linear2+bn7+lrelu -> linear3
# grid = (B, N_pad // tn); pooling accumulated in VMEM scratch; head at last chunk.
# BN scale is pre-folded into the weights; only the shift is applied in-kernel.
# ----------------------------------------------------------------------------
def _encoder_kernel(e_ref,
                    w1_ref, t1_ref, w2_ref, t2_ref, w3_ref, t3_ref, w4_ref, t4_ref,
                    w5_ref, t5_ref,
                    w6a_ref, w6b_ref, t6_ref,
                    w7_ref, t7_ref,
                    w8_ref, b8_ref,
                    o_ref,
                    max_acc, sum_acc, cat_ref,
                    *, n_points, n_padded, k, tn, act_dtype):
    step = pl.program_id(1)

    @pl.when(step == 0)
    def _init():
        max_acc[...] = jnp.full_like(max_acc, -jnp.inf)
        sum_acc[...] = jnp.zeros_like(sum_acc)

    def conv(h, w_ref, t_ref):
        # BN scale folded into w -> epilogue is add(shift) + leaky_relu only.
        z = jnp.dot(h, w_ref[...], preferred_element_type=jnp.float32)
        return _lrelu(z + t_ref[...]).astype(act_dtype)

    def kmax(h, c):
        # neighbor axis leading -> pure elementwise max over k slabs of (tn, c)
        return jnp.max(h.reshape(k, tn, c), axis=0)

    e = e_ref[0]                                           # (k, tn, cin) bf16
    e = e.reshape(k * tn, e.shape[-1])                     # tn % 8 == 0 -> layout-free

    h1 = conv(e, w1_ref, t1_ref);  m1 = kmax(h1, C1)       # (tn, 64)  bf16
    h2 = conv(h1, w2_ref, t2_ref); m2 = kmax(h2, C2)
    h3 = conv(h2, w3_ref, t3_ref); m3 = kmax(h3, C3)
    h4 = conv(h3, w4_ref, t4_ref); m4 = kmax(h4, C4)

    # single K=512 conv5 matmul: lane-concat via cheap VMEM scratch stores
    cat_ref[:, 0:C1] = m1
    cat_ref[:, C1:C1 + C2] = m2
    cat_ref[:, C1 + C2:C1 + C2 + C3] = m3
    cat_ref[:, C1 + C2 + C3:CPF] = m4
    z5 = jnp.dot(cat_ref[...], w5_ref[...], preferred_element_type=jnp.float32)
    h5 = _lrelu(z5 + t5_ref[...])                          # (tn, emb) f32

    if n_padded != n_points:
        rows = step * tn + lax.broadcasted_iota(jnp.int32, (tn, 1), 0)
        valid = rows < n_points
        h5_max = jnp.where(valid, h5, -jnp.inf)
        h5_sum = jnp.where(valid, h5, 0.0)
    else:
        h5_max = h5_sum = h5

    # running global max / sum over the point dimension
    max_acc[...] = jnp.maximum(max_acc[...], jnp.max(h5_max, axis=0, keepdims=True))
    sum_acc[...] = sum_acc[...] + jnp.sum(h5_sum, axis=0, keepdims=True)

    @pl.when(step == pl.num_programs(1) - 1)
    def _head():
        mx = max_acc[...].astype(act_dtype)                # (1, emb)
        av = (sum_acc[...] * (1.0 / n_points)).astype(act_dtype)
        # linear1 (no bias) on [max | avg]: split weights -> no lane concat
        z6 = (jnp.dot(mx, w6a_ref[...], preferred_element_type=jnp.float32)
              + jnp.dot(av, w6b_ref[...], preferred_element_type=jnp.float32))
        h6 = _lrelu(z6 + t6_ref[...])                      # (1, 512) f32
        # TODO(synk): dp1/dp2 dropout are identity here (eval-mode semantics).
        h7 = _lrelu(jnp.dot(h6.astype(act_dtype), w7_ref[...],
                            preferred_element_type=jnp.float32) + t7_ref[...])  # (1, 256)
        o_ref[...] = (jnp.dot(h7, w8_ref[...], preferred_element_type=jnp.float32)
                      + b8_ref[...])


# ----------------------------------------------------------------------------
# Parameters (deterministic synthetic init; eval-mode BN folded into scale/shift)
# ----------------------------------------------------------------------------
def init_params(key, feat_dim, emb_dims, output_channels):
    keys = iter(jax.random.split(key, 32))

    def w(shape, scale=0.1):
        return scale * jax.random.normal(next(keys), shape, jnp.float32)

    def bn(c):
        k1, k2, k3, k4 = jax.random.split(next(keys), 4)
        gamma = jax.random.uniform(k1, (c,), jnp.float32, 0.8, 1.2)
        beta = 0.1 * jax.random.normal(k2, (c,), jnp.float32)
        mean = 0.1 * jax.random.normal(k3, (c,), jnp.float32)
        var = jax.random.uniform(k4, (c,), jnp.float32, 0.5, 1.5)
        scale = gamma / jnp.sqrt(var + EPS)
        shift = beta - mean * scale
        return scale[None, :], shift[None, :]

    cin = 6 + feat_dim
    p = {}
    p["w1"] = w((cin, C1));   p["s1"], p["t1"] = bn(C1)
    p["w2"] = w((C1, C2));    p["s2"], p["t2"] = bn(C2)
    p["w3"] = w((C2, C3));    p["s3"], p["t3"] = bn(C3)
    p["w4"] = w((C3, C4));    p["s4"], p["t4"] = bn(C4)
    p["w5"] = w((CPF, emb_dims)); p["s5"], p["t5"] = bn(emb_dims)
    p["w6"] = w((emb_dims * 2, 512)); p["s6"], p["t6"] = bn(512)        # linear1 (no bias) + bn6
    p["w7"] = w((512, 256)); p["b7"] = w((1, 256)); p["s7"], p["t7"] = bn(256)  # linear2 + bn7
    p["w8"] = w((256, output_channels)); p["b8"] = w((1, output_channels))      # linear3
    return p


# ----------------------------------------------------------------------------
# Forward
# ----------------------------------------------------------------------------
def cvae_encoder_forward(params, x, *, emb_dims, output_channels, k=20,
                         act_dtype=jnp.bfloat16):
    B, N, D = x.shape
    feat_dim = D - 3
    cin = 6 + feat_dim
    p = params

    # generation-aware VMEM budget (48 MiB on v7x, 64 MiB on v5e/v6e)
    vmem_cap = _vmem_capacity_bytes()
    vmem_limit = min(64 * 1024 * 1024, int(0.75 * vmem_cap))

    # --- knn: pairwise metric in Pallas (bf16 output); top_k stays in XLA ---
    x3 = x[:, :, :3].astype(jnp.float32)
    pdist = pairwise_neg_sqdist(x3, out_dtype=jnp.bfloat16,
                                vmem_limit_bytes=vmem_limit)          # (B, N, N) bf16
    # TODO(synk): fuse the top-k selection into the pdist kernel (running per-row top-k in
    # VMEM scratch) to remove the (B, N, N) HBM round trip entirely.
    idx = lax.top_k(pdist, k)[1]                                       # (B, N, k), includes self

    # --- edge features in (B, k, N, cin) layout: [x_j | x_i | feat_i] channels-last ---
    # TODO(synk): move the neighbor gather in-kernel (per-batch point slab in VMEM + idx in
    # SMEM) to avoid the XLA gather and the lane-sparse cin-minor edge blocks.
    idx_kn = jnp.transpose(idx, (0, 2, 1))                             # (B, k, N)
    gathered = jax.vmap(lambda pts, ids: pts[ids])(x3, idx_kn)         # (B, k, N, 3)
    center = jnp.broadcast_to(x3[:, None, :, :], (B, k, N, 3))
    parts = [gathered, center]
    if feat_dim > 0:
        parts.append(jnp.broadcast_to(x[:, None, :, 3:].astype(jnp.float32),
                                      (B, k, N, feat_dim)))
    edge = jnp.concatenate(parts, axis=-1).astype(act_dtype)           # (B, k, N, cin)

    # --- point-chunk tile from an honest per-point VMEM estimate ---
    itm = jnp.dtype(act_dtype).itemsize
    bytes_pp = (k * 128 * itm * 2          # edge block (128-lane padded), double-buffered
                + k * CPF * itm            # h1..h4 bf16 activations
                + k * (C3 + C4) * 4        # widest f32 pre-activations in flight
                + CPF * itm                # concat scratch
                + emb_dims * 12)           # z5/h5 f32 (+ masked copy)
    weight_bytes = ((cin * C1 + C1 * C2 + C2 * C3 + C3 * C4 + CPF * emb_dims
                     + 2 * emb_dims * 512 + 512 * 256) * itm
                    + 256 * output_channels * 4)
    budget = max(1 << 20, int(0.55 * vmem_limit) - 2 * weight_bytes)
    tn = max(8, min(1024, _round_down_pow2(budget // bytes_pp)))
    tn = min(tn, _round_up(N, 8))
    tn = max(8, (tn // 8) * 8)
    n_pad = _round_up(N, tn)
    if n_pad != N:
        edge = jnp.pad(edge, ((0, 0), (0, 0), (0, n_pad - N), (0, 0)))

    # --- fold BN scale into weights (shift-only epilogue in kernel), bf16 matmul weights ---
    def fold(w_, s_):
        return (w_ * s_).astype(act_dtype)

    w1 = fold(p["w1"], p["s1"]); w2 = fold(p["w2"], p["s2"])
    w3 = fold(p["w3"], p["s3"]); w4 = fold(p["w4"], p["s4"])
    w5 = fold(p["w5"], p["s5"])
    w6 = p["w6"] * p["s6"]
    w6a = w6[:emb_dims].astype(act_dtype)                  # consumes global-max branch
    w6b = w6[emb_dims:].astype(act_dtype)                  # consumes global-avg branch
    w7 = fold(p["w7"], p["s7"])
    t7 = p["b7"] * p["s7"] + p["t7"]                       # fold linear2 bias into the shift
    w8 = p["w8"]; b8 = p["b8"]                             # final layer stays f32

    weight_args = (w1, p["t1"], w2, p["t2"], w3, p["t3"], w4, p["t4"],
                   w5, p["t5"], w6a, w6b, p["t6"], w7, t7, w8, b8)

    def cspec(a):
        # constant block index -> Pallas keeps the weight resident (no re-DMA per step)
        return pl.BlockSpec(a.shape, lambda b, n: (0, 0))

    out = pl.pallas_call(
        functools.partial(_encoder_kernel, n_points=N, n_padded=n_pad, k=k, tn=tn,
                          act_dtype=act_dtype),
        out_shape=jax.ShapeDtypeStruct((B, output_channels), jnp.float32),
        grid=(B, n_pad // tn),
        in_specs=[pl.BlockSpec((1, k, tn, cin), lambda b, n: (b, 0, n, 0))]
                 + [cspec(a) for a in weight_args],
        out_specs=pl.BlockSpec((1, output_channels), lambda b, n: (b, 0)),
        scratch_shapes=[pltpu.VMEM((1, emb_dims), jnp.float32),   # running max
                        pltpu.VMEM((1, emb_dims), jnp.float32),   # running sum
                        pltpu.VMEM((tn, CPF), act_dtype)],        # conv5 concat
        compiler_params=pltpu.CompilerParams(
            dimension_semantics=("parallel", "arbitrary"),
            vmem_limit_bytes=vmem_limit),
    )(edge, *weight_args)
    # TODO(synk): on v7x (2 TensorCores) also split the N axis across cores when B is small
    # (per-core partial max/sum outputs combined outside the kernel).
    return out


if __name__ == "__main__":
    # Small, self-consistent sizes: N must be >= k for knn(k=20).
    B, N, K = 2, 32, 20
    FEAT_DIM = 2                  # extra per-point features beyond xyz
    D = 3 + FEAT_DIM
    EMB_DIMS = 64
    OUTPUT_CHANNELS = 8

    root = jax.random.PRNGKey(0)
    kx, kp = jax.random.split(root)
    x = jax.random.normal(kx, (B, N, D), jnp.float32)       # (B, N, 3+feat_dim), channels-last
    params = init_params(kp, FEAT_DIM, EMB_DIMS, OUTPUT_CHANNELS)

    y = cvae_encoder_forward(params, x, emb_dims=EMB_DIMS,
                             output_channels=OUTPUT_CHANNELS, k=K)
    y = jax.block_until_ready(y)
    assert y.shape == (B, OUTPUT_CHANNELS) and bool(jnp.all(jnp.isfinite(y)))
    print("KERNEL_OK")
</pallas_src>

<mosaic_0001>
module attributes {stable_mosaic.version = 11 : i64} {
  func.func @_pdist_kernel(%arg0: i32, %arg1: i32, %arg2: memref<1x32x8xf32, #tpu.memory_space<vmem>>, %arg3: memref<1x8x32xf32, #tpu.memory_space<vmem>>, %arg4: memref<1x32x32xbf16, #tpu.memory_space<vmem>>) attributes {dimension_semantics = [#tpu.dimension_semantics<parallel>, #tpu.dimension_semantics<parallel>], iteration_bounds = array<i64: 2, 1>, scalar_prefetch = 0 : i64, scratch_operands = 0 : i64, tpu.core_type = #tpu.core_type<tc>, window_params = [{transform_indices = @transform_0, window_bounds = array<i64: 1, 32, 8>}, {transform_indices = @transform_1, window_bounds = array<i64: 1, 8, 32>}, {transform_indices = @transform_2, window_bounds = array<i64: 1, 32, 32>}]} {
    %c0 = arith.constant 0 : index
    %c0_0 = arith.constant 0 : index
    %c0_1 = arith.constant 0 : index
    %0 = vector.load %arg2[%c0, %c0_0, %c0_1] : memref<1x32x8xf32, #tpu.memory_space<vmem>>, vector<1x32x8xf32>
    %1 = vector.shape_cast %0 : vector<1x32x8xf32> to vector<32x8xf32>
    %c0_2 = arith.constant 0 : index
    %c0_3 = arith.constant 0 : index
    %c0_4 = arith.constant 0 : index
    %2 = vector.load %arg3[%c0_2, %c0_3, %c0_4] : memref<1x8x32xf32, #tpu.memory_space<vmem>>, vector<1x8x32xf32>
    %3 = vector.shape_cast %2 : vector<1x8x32xf32> to vector<8x32xf32>
    %cst = arith.constant dense<0.000000e+00> : vector<32x32xf32>
    %4 = tpu.matmul %1, %3, %cst {dimension_numbers = #tpu.dot_dimension_numbers<[1], [0], [0], [1], [0, 0, 1, 1], [], []>} : vector<32x8xf32>, vector<8x32xf32>, vector<32x32xf32> -> vector<32x32xf32>
    %5 = arith.truncf %4 : vector<32x32xf32> to vector<32x32xbf16>
    %c0_5 = arith.constant 0 : index
    %c0_6 = arith.constant 0 : index
    %c0_7 = arith.constant 0 : index
    %6 = vector.load %arg4[%c0_5, %c0_6, %c0_7] : memref<1x32x32xbf16, #tpu.memory_space<vmem>>, vector<1x32x32xbf16>
    %7 = vector.shape_cast %6 : vector<1x32x32xbf16> to vector<32x32xbf16>
    %8 = vector.shape_cast %5 : vector<32x32xbf16> to vector<1x32x32xbf16>
    tpu.vector_store %arg4[%c0_5, %c0_6, %c0_7], %8 {strides = array<i32>} : memref<1x32x32xbf16, #tpu.memory_space<vmem>>, vector<1x32x32xbf16>,
    return
  }
  func.func @transform_0(%arg0: i32, %arg1: i32) -> (i32, i32, i32) {
    %c0_i32 = arith.constant 0 : i32
    %c0_i32_0 = arith.constant 0 : i32
    return %arg0, %arg1, %c0_i32 : i32, i32, i32
  }
  func.func @transform_1(%arg0: i32, %arg1: i32) -> (i32, i32, i32) {
    %c0_i32 = arith.constant 0 : i32
    %c0_i32_0 = arith.constant 0 : i32
    %c0_i32_1 = arith.constant 0 : i32
    return %arg0, %c0_i32, %c0_i32_0 : i32, i32, i32
  }
  func.func @transform_2(%arg0: i32, %arg1: i32) -> (i32, i32, i32) {
    %c0_i32 = arith.constant 0 : i32
    %c0_i32_0 = arith.constant 0 : i32
    return %arg0, %arg1, %c0_i32 : i32, i32, i32
  }
}

</mosaic_0001>

<bundles_post_ra>
// kernel: tpu_custom_call.1
= control target key start
LH: loop header
LB: loop body
LE: loop exit
PB: predicated region body
PF: predicated region fallthrough
CT: control target
= control target key end

     0   :  { %7 = vsyncpa [#allocation3], 0  ;;  %s734_s0 = inlined_call_operand.vmem [shape: f32[2,32,8], index: 0, kind: input, shape index: {}]   ;;  %s735_s1 = inlined_call_operand.vmem [shape: f32[2,8,32], index: 1, kind: input, shape index: {}]   ;;  %s736_s2 = inlined_call_operand.hbm [shape: bf16[2,32,32], index: 2, kind: output, shape index: {}]  }
   0x1   :  { %9 = vsyncpa [#allocation3 + $0x1], 0  ;;  %s617_s9 = smov 0   ;;  %s619_s10 = smov 0  }
   0x2   :  { %s621_s11 = smov 0   ;;  %s623_s12 = smov 0  }
   0x3   :  { %s625_s13 = smov 0   ;;  %s627_s14 = smov 0  }
   0x4 LB: > { %s421_s15 = sadd.s32 4294967295, %s597_s14   ;;  %s422_s16 = sadd.s32 4294967294, %s597_s14   ;;  %s597_s14 = sphi %s627_s14, %s15_s14   ;;  %s593_s13 = sphi %s625_s13, %s743_s13   ;;  %s589_s12 = sphi %s623_s12, %s742_s12   ;;  %s585_s11 = sphi %s621_s11, %s741_s11   ;;  %s581_s10 = sphi %s619_s10, %s740_s10   ;;  %s577_s9 = sphi %s617_s9, %s739_s9  }
   0x5   : > { %s27_s17 = sadd.s32 1, %s593_s13  ;;  %s90_s18 = sadd.s32 1, %s585_s11 }
   0x6   : > { %p29_p0 = scmp.ge.s32.totalorder %s27_s17, 2  ;;  %p100_p1 = scmp.ne.s32.totalorder %s585_s11, %s581_s10 }
   0x7   : > { %p101_p2 = scmp.eq.s32.totalorder %s421_s15, 1  ;;  %p106_p3 = scmp.ne.s32.totalorder %s581_s10, %s577_s9 }
   0x8   : > { %s745_s17 = smov (%p29_p0, %s27_s17), 0  ;;  %p107_p5 = scmp.eq.s32.totalorder %s422_s16, 1 }
   0x9   : > { %p657_p4 = por %p101_p2, %p100_p1  ;;  %s85_s20 = ssub.s32 %s593_s13, %s745_s17 }
   0xa   : > { %p425_p6 = scmp.ge.s32.totalorder %s597_s14, 1  ;;  %p88_p7 = scmp.eq.s32.totalorder %s85_s20, 0 }
   0xb   : > { %p664_p8 = por %p107_p5, %p106_p3  ;;  %p145_p9 = scmp.lt.s32.totalorder %s597_s14, 3 }
   0xc   : > { %s670_s22 = scalar_select %p88_p7, %s585_s11, %s90_s18  }
   0xd   : > { %p146_p10 = pnand %p425_p6, %p145_p9 }
   0xe   : > { %p176_p11 = scmp.lt.s32.totalorder (!%p146_p10), %s589_s12, 1  ;;  %s172_s4 = sand.u32 (!%p146_p10), 1, %s581_s10  }
   0xf   : > { %149 = sbr.rel (%p146_p10) target bundleno = 239 (0xef), region = 28  ;;  %s426_s5 = sshll.u32 (!%p146_p10), %s172_s4, 4 }
  0x10   : > { %s174_s6 = scalar_lea.vmem (!%p146_p10), [#allocation2], %s426_s5  ;;  %s448_s8 = sshll.u32 (!%p146_p10), %s589_s12, 8 }
  0x11   : > { %s330_s7 = sshll.u32 (!%p146_p10), %s174_s6, 4  ;;  %s687_s18 = scalar_lea.hbm (!%p146_p10), %s736_s2, %s448_s8  ;;  %s682_s7 = int_to_ptr.vmem [resolvable:$true] %s330_s7 }
  0x12   : > { %s521_s20 = scalar_lea.vmem (!%p146_p10), %s682_s7, 256 }
  0x13   : > { %p522_p12 = scmp.ne.s32.totalorder (!%p146_p10), %s682_s7, %s521_s20 }
  0x14   : > { %s177_s23 = scalar_select %p176_p11, %s589_s12, 1  ;;  %vm195_vm0 = vcmask 64512   ;;  %vm309_vm1 = vcmask 257024  }
  0x15   : > { %s689_s12 = scalar_lea.sflag [#allocation3], %s172_s4  ;;  %p523_p13 = pnand %p522_p12, %p657_p4 }
  0x16   : > { %s429_s24 = sshll.u32 %s177_s23, 3  ;;  %s443_s25 = sshll.u32 %s177_s23, 5 }
  0x17   : > { %s188_s28 = scalar_lea.vmem %s735_s1, %s429_s24  ;;  %s183_s3 = scalar_lea.vmem %s734_s0, %s443_s25 }
  0x18   : > { %v194_v0 = vld [vmem:[%s188_s28] sm:$0xff]  ;;  %v192_v2 = vld [vmem:[%s183_s3 + $0x10] sm:$0xff]  ;;  %v191_v3 = vld [vmem:[%s183_s3 + $0x8] sm:$0xff]  ;;  %p524_p0 = pneg %p523_p13  ;;  %s599_s23 = smov [#allocation2]  }
  0x19   : > { %v190_v1 = vld [vmem:[%s183_s3] sm:$0xff]  ;;  %454 = vmatprep.subr.mxu0 %v194_v0  ;;  %462 = vmatprep.subr.mxu1 %v194_v0  ;;  %v193_v4 = vld [vmem:[%s183_s3 + $0x18] sm:$0xff]  ;;  %s525_s24 = sshll.u32 %s599_s23, 4  ;;  %s526_s24 = int_to_ptr.vmem [resolvable:$false] %s525_s24 }
  0x1a   : > { %455 = vmatpush3.msra.mxu0 %v194_v0  ;;  %463 = vmatpush3.msra.mxu1 %v194_v0  ;;  %s527_s25 = scalar_lea.vmem %s526_s24, 512  ;;  %p528_p1 = scmp.lt.s32.totalorder %s682_s7, %s526_s24 }
  0x1b   : > { %456 = vmatprep.mubr.msk.f32.mxu0 %vm195_vm0, %v190_v1  ;;  %459 = vmatprep.mubr.msk.f32.mxu1 %vm195_vm0, %v192_v2  ;;  %p529_p2 = scmp.lt.s32.totalorder %s527_s25, %s521_s20 }
  0x1c   : > { %457 = vmatmul.mubr.msk.f32.vlgmr.msra.gmra.mxu0 %vm195_vm0, %v191_v3  ;;  %460 = vmatmul.mubr.msk.f32.vlgmr.msra.gmra.mxu1 %vm195_vm0, %v193_v4 }
  0x1d   : > { %p530_p3 = por %p529_p2, %p528_p1 }
  0x1f   : > { %p531_p5 = pnand %p530_p3, %p524_p0 }
  0xdc   : > { %v458_v5 = vpop.f32.mrf.mxu0  ;;  %v461_v6 = vpop.f32.mrf.mxu1 }
  0xdd   : > { %v445_v7 = vpack.c.bf16 %v458_v5, %v458_v5  ;;  %v447_v8 = vpack.c.bf16 %v461_v6, %v461_v6 }
  0xde   : > { %v274_v9 = vpop.f32.mrf.mxu0  ;;  %v284_v10 = vpop.f32.mrf.mxu1 }
  0xdf   : > { %311 = vst.msk [vmem:[%s174_s6 + $0x4] sm:$0xf] %vm309_vm1, %v445_v7  ;;  %313 = vst.msk [vmem:[%s174_s6 + $0xc] sm:$0xf] %vm309_vm1, %v447_v8  ;;  %v444_v11 = vpack.c.bf16 %v274_v9, %v274_v9  ;;  %v446_v12 = vpack.c.bf16 %v284_v10, %v284_v10 }
  0xe1   : > { %310 = vst.msk [vmem:[%s174_s6] sm:$0xf] %vm309_vm1, %v444_v11  ;;  %312 = vst.msk [vmem:[%s174_s6 + $0x8] sm:$0xf] %vm309_vm1, %v446_v12 }
  0xe2   : > { %534 = shalt.err (!%p531_p5)
}
  0xe3   : > { %s535_s26 = scalar_lea.hbm %s687_s18, 256  ;;  %s539_s29 = scalar_lea.hbm %s736_s2, 512 }
  0xe4   : > { %p536_p6 = scmp.ne.s32.totalorder %s687_s18, %s535_s26  ;;  %p540_p10 = scmp.lt.s32.totalorder %s687_s18, %s736_s2 }
  0xe5   : > { %p541_p11 = scmp.lt.s32.totalorder %s539_s29, %s535_s26 }
  0xe6   : > { %p537_p7 = pnand %p536_p6, %p657_p4 }
  0xe7   : > { %p542_p12 = por %p541_p11, %p540_p10 }
  0xe8   : > { %p538_p9 = pneg %p537_p7 }
  0xea   : > { %p543_p13 = pnand %p542_p12, %p538_p9 }
  0xec   : > { %546 = shalt.err (!%p543_p13)
}
  0xed   : > { %s600_s4 = smov 64   ;;  %s601_s5 = smov 4  }
  0xee   : > { %464 = dma.vmem_to_hbm [thread:$0]  (%p657_p4), %s682_s7, 256, %s687_s18, %s689_s12, %s600_s4, %s600_s4, %s601_s5  }
  0xef PF: > { %p470_p0 = scmp.ge.s32.totalorder %s597_s14, 2  ;;  %s345_s6 = sand.u32 1, %s577_s9  }
  0xf0   : > { %s346_s8 = scalar_lea.sflag [#allocation3], %s345_s6 }
  0xf1   : > { %p467_p1 = pnand %p470_p0, %p664_p8 }
  0xf3   : > { %p468_p2 = pneg %p467_p1 }
  0xf5   : > { %572 = dma.done.wait (%p468_p2), %s346_s8, 256  }
  0xf6   : > { %574 = vsyncadd (%p468_p2), %s346_s8, 4294967040  ;;  %s15_s14 = sadd.s32 1, %s597_s14   ;;  %s739_s9 = smov %s581_s10 }
  0xf7   : > { %p12_p3 = scmp.ge.s32.totalorder %s15_s14, 4   ;;  %s740_s10 = smov %s585_s11 }
  0xf8   : > { %s741_s11 = smov %s670_s22  ;;  %s742_s12 = smov %s593_s13 }
  0xf9   : > { %s743_s13 = smov %s745_s17  ;;  %14 = sbr.rel (!%p12_p3) target bundleno = 4 (0x4), region = 66 }
  0xfe   :  { %351 = vsyncpa [#allocation3], 1 }
  0xff   :  { %353 = vsyncpa [#allocation3 + $0x1], 1 }

</bundles_post_ra>
